<compile_context>
chip_gen: v6e
topology: v6e:2x2x1
jax: 0.10.0
libtpu: 0.0.40
codegen_flags: <defaults>
</compile_context>

<pallas_src>
import functools
import math

import jax
import jax.numpy as jnp
from jax import lax
from jax.experimental import pallas as pl
from jax.experimental.pallas import tpu as pltpu


def layer_simple_kernel(x_ref, w_ref, b_ref, gamma_ref, beta_ref, o_ref, *, use_bf16):
    # Linear: (N, in_dim) @ (in_dim, tile_n) + bias -> MXU matmul, f32 accumulate
    x = x_ref[...]
    w = w_ref[...]
    if use_bf16:
        # bf16-native MXU path (v5e/v6e/v7x); keep f32 accumulation.
        x = x.astype(jnp.bfloat16)
        w = w.astype(jnp.bfloat16)
    z = jnp.dot(x, w, preferred_element_type=jnp.float32) + b_ref[...]

    # BatchNorm1d training mode: per-feature batch mean / biased variance.
    # Batch axis is never tiled, so these stats are exact.
    n = z.shape[0]
    inv_n = 1.0 / n
    mean = jnp.sum(z, axis=0, keepdims=True) * inv_n
    centered = z - mean
    var = jnp.sum(centered * centered, axis=0, keepdims=True) * inv_n
    z_hat = centered * lax.rsqrt(var + 1e-5)
    y = z_hat * gamma_ref[...] + beta_ref[...]

    # Exact GELU (nn.GELU default): 0.5 * y * (1 + erf(y / sqrt(2)))
    out = 0.5 * y * (1.0 + lax.erf(y * (1.0 / math.sqrt(2.0))))

    # Dropout p=0.0 -> Identity
    o_ref[...] = out.astype(o_ref.dtype)


def _pick_feature_tile(out_dim, max_tile):
    """Largest lane-dense (multiple-of-128) tile that divides out_dim."""
    if out_dim <= max_tile:
        return out_dim
    for t in (1024, 768, 512, 384, 256, 128):
        if t <= max_tile and out_dim % t == 0:
            return t
    return out_dim  # fall back to a single tile if out_dim is not 128-aligned


def layer_simple(x, w_t, b, gamma, beta, *, max_feature_tile=512,
                 use_bf16_matmul=False):
    """x: (N, in_dim) f32; w_t: (in_dim, out_dim); b/gamma/beta: (1, out_dim)."""
    n, in_dim = x.shape
    out_dim = w_t.shape[1]

    tile_n = _pick_feature_tile(out_dim, max_feature_tile)
    num_tiles = out_dim // tile_n

    # Explicit VMEM budget: double-buffered weight/param/output tiles plus the
    # resident x block, with 2x headroom; clamp inside v7x's 64 MiB VMEM.
    tile_bytes = 4 * (
        2 * in_dim * tile_n      # w_t tile, double-buffered
        + 2 * n * tile_n         # output tile, double-buffered
        + 2 * 3 * tile_n         # b / gamma / beta tiles
        + 2 * n * in_dim         # resident x block
    )
    vmem_limit = int(min(max(2 * tile_bytes, 16 << 20), 48 << 20))

    kernel = functools.partial(layer_simple_kernel, use_bf16=use_bf16_matmul)

    return pl.pallas_call(
        kernel,
        out_shape=jax.ShapeDtypeStruct((n, out_dim), jnp.float32),
        grid=(num_tiles,),
        in_specs=[
            pl.BlockSpec((n, in_dim), lambda j: (0, 0)),      # x resident
            pl.BlockSpec((in_dim, tile_n), lambda j: (0, j)), # weight tile
            pl.BlockSpec((1, tile_n), lambda j: (0, j)),      # bias tile
            pl.BlockSpec((1, tile_n), lambda j: (0, j)),      # gamma tile
            pl.BlockSpec((1, tile_n), lambda j: (0, j)),      # beta tile
        ],
        out_specs=pl.BlockSpec((n, tile_n), lambda j: (0, j)),
        compiler_params=pltpu.CompilerParams(
            # Feature tiles are fully independent -> megacore sharding on v7x.
            dimension_semantics=("parallel",),
            vmem_limit_bytes=vmem_limit,
        ),
    )(x, w_t, b, gamma, beta)


if __name__ == "__main__":
    # Small but non-degenerate shapes: 2 feature tiles of 256 so the grid,
    # pipelining and "parallel" semantics are actually exercised.
    N, IN_DIM, OUT_DIM = 32, 64, 512

    key = jax.random.PRNGKey(0)
    kx, kw, kb, kg, kbt = jax.random.split(key, 5)

    x = jax.random.normal(kx, (N, IN_DIM), dtype=jnp.float32)

    # nn.Linear init: U(-1/sqrt(in_dim), 1/sqrt(in_dim)) for weight and bias.
    bound = 1.0 / math.sqrt(IN_DIM)
    w = jax.random.uniform(kw, (OUT_DIM, IN_DIM), jnp.float32, -bound, bound)
    b = jax.random.uniform(kb, (1, OUT_DIM), jnp.float32, -bound, bound)

    # BatchNorm1d affine params (default gamma=1, beta=0; perturb deterministically).
    gamma = jnp.ones((1, OUT_DIM), jnp.float32) + 0.1 * jax.random.normal(
        kg, (1, OUT_DIM), jnp.float32)
    beta = 0.1 * jax.random.normal(kbt, (1, OUT_DIM), jnp.float32)

    w_t = w.T  # pre-transpose so kernel does x @ W

    out = layer_simple(x, w_t, b, gamma, beta, max_feature_tile=256)
    jax.block_until_ready(out)

    # Pure-JAX reference (linear -> train-mode BN -> exact GELU).
    z_ref = x @ w_t + b
    mean_ref = z_ref.mean(axis=0, keepdims=True)
    var_ref = ((z_ref - mean_ref) ** 2).mean(axis=0, keepdims=True)
    y_ref = (z_ref - mean_ref) / jnp.sqrt(var_ref + 1e-5) * gamma + beta
    ref = 0.5 * y_ref * (1.0 + lax.erf(y_ref / math.sqrt(2.0)))
    assert jnp.allclose(out, ref, atol=1e-5, rtol=1e-5), "mismatch vs reference"

    print("KERNEL_OK")
</pallas_src>

<mosaic_0001>
module attributes {stable_mosaic.version = 11 : i64} {
  func.func @layer_simple_kernel(%arg0: i32, %arg1: memref<32x64xf32, #tpu.memory_space<vmem>>, %arg2: memref<64x256xf32, #tpu.memory_space<vmem>>, %arg3: memref<1x256xf32, #tpu.memory_space<vmem>>, %arg4: memref<1x256xf32, #tpu.memory_space<vmem>>, %arg5: memref<1x256xf32, #tpu.memory_space<vmem>>, %arg6: memref<32x256xf32, #tpu.memory_space<vmem>>) attributes {dimension_semantics = [#tpu.dimension_semantics<parallel>], iteration_bounds = array<i64: 2>, scalar_prefetch = 0 : i64, scratch_operands = 0 : i64, tpu.core_type = #tpu.core_type<tc>, window_params = [{pipeline_mode = #tpu.pipeline_mode<synchronous>, transform_indices = @transform_0, window_bounds = array<i64: 32, 64>}, {transform_indices = @transform_1, window_bounds = array<i64: 64, 256>}, {transform_indices = @transform_2, window_bounds = array<i64: 1, 256>}, {transform_indices = @transform_3, window_bounds = array<i64: 1, 256>}, {transform_indices = @transform_4, window_bounds = array<i64: 1, 256>}, {transform_indices = @transform_5, window_bounds = array<i64: 32, 256>}]} {
    %c0 = arith.constant 0 : index
    %c0_0 = arith.constant 0 : index
    %0 = vector.load %arg1[%c0, %c0_0] : memref<32x64xf32, #tpu.memory_space<vmem>>, vector<32x64xf32>
    %c0_1 = arith.constant 0 : index
    %c0_2 = arith.constant 0 : index
    %1 = vector.load %arg2[%c0_1, %c0_2] : memref<64x256xf32, #tpu.memory_space<vmem>>, vector<64x256xf32>
    %cst = arith.constant dense<0.000000e+00> : vector<32x256xf32>
    %2 = tpu.matmul %0, %1, %cst {dimension_numbers = #tpu.dot_dimension_numbers<[1], [0], [0], [1], [0, 0, 1, 1], [], []>} : vector<32x64xf32>, vector<64x256xf32>, vector<32x256xf32> -> vector<32x256xf32>
    %c0_3 = arith.constant 0 : index
    %c0_4 = arith.constant 0 : index
    %3 = vector.load %arg3[%c0_3, %c0_4] : memref<1x256xf32, #tpu.memory_space<vmem>>, vector<1x256xf32>
    %4 = vector.broadcast %3 : vector<1x256xf32> to vector<32x256xf32>
    %5 = arith.addf %2, %4 : vector<32x256xf32>
    %cst_5 = arith.constant dense<0.000000e+00> : vector<256xf32>
    %6 = vector.multi_reduction <add>, %5, %cst_5 [0] : vector<32x256xf32> to vector<256xf32>
    %7 = vector.shape_cast %6 : vector<256xf32> to vector<1x256xf32>
    %cst_6 = arith.constant 3.125000e-02 : f32
    %8 = vector.broadcast %cst_6 : f32 to vector<1x256xf32>
    %9 = arith.mulf %7, %8 : vector<1x256xf32>
    %10 = vector.broadcast %9 : vector<1x256xf32> to vector<32x256xf32>
    %11 = arith.subf %5, %10 : vector<32x256xf32>
    %12 = arith.mulf %11, %11 : vector<32x256xf32>
    %cst_7 = arith.constant dense<0.000000e+00> : vector<256xf32>
    %13 = vector.multi_reduction <add>, %12, %cst_7 [0] : vector<32x256xf32> to vector<256xf32>
    %14 = vector.shape_cast %13 : vector<256xf32> to vector<1x256xf32>
    %cst_8 = arith.constant 3.125000e-02 : f32
    %15 = vector.broadcast %cst_8 : f32 to vector<1x256xf32>
    %16 = arith.mulf %14, %15 : vector<1x256xf32>
    %cst_9 = arith.constant 9.99999974E-6 : f32
    %17 = vector.broadcast %cst_9 : f32 to vector<1x256xf32>
    %18 = arith.addf %16, %17 : vector<1x256xf32>
    %19 = math.rsqrt %18 : vector<1x256xf32>
    %20 = vector.broadcast %19 : vector<1x256xf32> to vector<32x256xf32>
    %21 = arith.mulf %11, %20 : vector<32x256xf32>
    %c0_10 = arith.constant 0 : index
    %c0_11 = arith.constant 0 : index
    %22 = vector.load %arg4[%c0_10, %c0_11] : memref<1x256xf32, #tpu.memory_space<vmem>>, vector<1x256xf32>
    %23 = vector.broadcast %22 : vector<1x256xf32> to vector<32x256xf32>
    %24 = arith.mulf %21, %23 : vector<32x256xf32>
    %c0_12 = arith.constant 0 : index
    %c0_13 = arith.constant 0 : index
    %25 = vector.load %arg5[%c0_12, %c0_13] : memref<1x256xf32, #tpu.memory_space<vmem>>, vector<1x256xf32>
    %26 = vector.broadcast %25 : vector<1x256xf32> to vector<32x256xf32>
    %27 = arith.addf %24, %26 : vector<32x256xf32>
    %cst_14 = arith.constant 5.000000e-01 : f32
    %28 = vector.broadcast %cst_14 : f32 to vector<32x256xf32>
    %29 = arith.mulf %28, %27 : vector<32x256xf32>
    %cst_15 = arith.constant 0.707106769 : f32
    %30 = vector.broadcast %cst_15 : f32 to vector<32x256xf32>
    %31 = arith.mulf %27, %30 : vector<32x256xf32>
    %32 = math.erf %31 : vector<32x256xf32>
    %cst_16 = arith.constant 1.000000e+00 : f32
    %33 = vector.broadcast %cst_16 : f32 to vector<32x256xf32>
    %34 = arith.addf %33, %32 : vector<32x256xf32>
    %35 = arith.mulf %29, %34 : vector<32x256xf32>
    %c0_17 = arith.constant 0 : index
    %c0_18 = arith.constant 0 : index
    %36 = vector.load %arg6[%c0_17, %c0_18] : memref<32x256xf32, #tpu.memory_space<vmem>>, vector<32x256xf32>
    tpu.vector_store %arg6[%c0_17, %c0_18], %35 {strides = array<i32>} : memref<32x256xf32, #tpu.memory_space<vmem>>, vector<32x256xf32>,
    return
  }
  func.func @transform_0(%arg0: i32) -> (i32, i32) {
    %c0_i32 = arith.constant 0 : i32
    %c0_i32_0 = arith.constant 0 : i32
    %c0_i32_1 = arith.constant 0 : i32
    return %c0_i32, %c0_i32_0 : i32, i32
  }
  func.func @transform_1(%arg0: i32) -> (i32, i32) {
    %c0_i32 = arith.constant 0 : i32
    %c0_i32_0 = arith.constant 0 : i32
    return %c0_i32, %arg0 : i32, i32
  }
  func.func @transform_2(%arg0: i32) -> (i32, i32) {
    %c0_i32 = arith.constant 0 : i32
    %c0_i32_0 = arith.constant 0 : i32
    return %c0_i32, %arg0 : i32, i32
  }
  func.func @transform_3(%arg0: i32) -> (i32, i32) {
    %c0_i32 = arith.constant 0 : i32
    %c0_i32_0 = arith.constant 0 : i32
    return %c0_i32, %arg0 : i32, i32
  }
  func.func @transform_4(%arg0: i32) -> (i32, i32) {
    %c0_i32 = arith.constant 0 : i32
    %c0_i32_0 = arith.constant 0 : i32
    return %c0_i32, %arg0 : i32, i32
  }
  func.func @transform_5(%arg0: i32) -> (i32, i32) {
    %c0_i32 = arith.constant 0 : i32
    %c0_i32_0 = arith.constant 0 : i32
    return %c0_i32, %arg0 : i32, i32
  }
}

</mosaic_0001>

<bundles_post_ra>
// kernel: tpu_custom_call.1
= control target key start
LH: loop header
LB: loop body
LE: loop exit
PB: predicated region body
PF: predicated region fallthrough
CT: control target
= control target key end

     0   :  { %s1466_s0 = inlined_call_operand.hbm [shape: f32[32,64], index: 0, kind: input, shape index: {}]   ;;  %s1467_s1 = inlined_call_operand.hbm [shape: f32[64,512], index: 1, kind: input, shape index: {}]   ;;  %s1468_s2 = inlined_call_operand.hbm [shape: f32[1,512], index: 2, kind: input, shape index: {}]   ;;  %s1469_s3 = inlined_call_operand.vmem [shape: f32[1,512], index: 3, kind: input, shape index: {}]   ;;  %s1470_s4 = inlined_call_operand.hbm [shape: f32[1,512], index: 4, kind: input, shape index: {}]   ;;  %s1471_s5 = inlined_call_operand.hbm [shape: f32[32,512], index: 5, kind: output, shape index: {}]  }
   0x1   :  { %1482 = sst [smem:[#allocation18_spill]] %s1467_s1 }
   0x2   :  { %10 = vsyncpa [#allocation3], 0 }
   0x3   :  { %11 = vsyncpa [#allocation6], 0 }
   0x4   :  { %13 = vsyncpa [#allocation6 + $0x1], 0 }
   0x5   :  { %14 = vsyncpa [#allocation9], 0 }
   0x6   :  { %16 = vsyncpa [#allocation9 + $0x1], 0 }
   0x7   :  { %17 = vsyncpa [#allocation4], 0 }
   0x8   :  { %19 = vsyncpa [#allocation4 + $0x1], 0  ;;  %s1168_s18 = smov 0   ;;  %s1170_s19 = smov 0  }
   0x9   :  { %s1172_s20 = smov 0   ;;  %s1174_s21 = smov 0  }
   0xa LB: > { %1483 = sst [smem:[#allocation15_spill]] %s1118_s20  ;;  %s1189_s22 = sadd.s32 1, %s1122_s21   ;;  %s1122_s21 = sphi %s1174_s21, %s1504_s21   ;;  %s1118_s20 = sphi %s1172_s20, %s1506_s20   ;;  %s1114_s19 = sphi %s1170_s19, %s1508_s19   ;;  %s1110_s18 = sphi %s1168_s18, %s1507_s18  }
   0xb   : > { %1484 = sst [smem:[#allocation16_spill]] %s1189_s22  ;;  %s53_s23 = sadd.s32 1, %s1118_s20 }
   0xc   : > { %s50_s24 = ssub.s32 %s1122_s21, %s1189_s22  ;;  %p1472_p0 = scmp.ne.s32.totalorder %s1118_s20, %s1114_s19 }
   0xd   : > { %p51_p1 = scmp.eq.s32.totalorder %s50_s24, 0  ;;  %p61_p2 = scmp.eq.s32.totalorder %s1122_s21, 0 }
   0xe   : > { %p875_p4 = scmp.lt.s32.totalorder %s1122_s21, 2  ;;  %s207_s26 = sand.u32 1, %s1122_s21  }
   0xf   : > { %s1200_s25 = scalar_select %p51_p1, %s1118_s20, %s53_s23  }
  0x10   : > { %p62_p5 = por %p61_p2, %p1472_p0  ;;  %s1207_s27 = sand.u32 1, %s1118_s20  }
  0x11   : > { %1485 = sst [smem:[#allocation17_spill]] %s1200_s25  ;;  %s799_s28 = sshll.u32 %s1207_s27, 7 }
  0x12   : > { %s824_s29 = sshll.u32 %s1122_s21, 8  ;;  %s1486_s1 = sld [smem:[#allocation18_spill]] }
  0x13   : > { %s211_s8 = scalar_lea.vmem [#allocation5], %s799_s28  ;;  %p1216_p6 = pnand %p875_p4, %p62_p5 }
  0x14   : > { %s218_s9 = sshll.u32 %s211_s8, 4  ;;  %s1222_s11 = scalar_lea.sflag [#allocation6], %s207_s26  ;;  %s1220_s9 = int_to_ptr.vmem [resolvable:$true] %s218_s9 }
  0x15   : > { %p1228_p8 = pneg %p1216_p6 }
  0x18   : > { %s1214_s7 = scalar_lea.hbm %s1486_s1, %s824_s29  ;;  %s945_s16 = scalar_lea.hbm %s1486_s1, 4096 }
  0x19   : > { %s940_s12 = scalar_lea.hbm %s1214_s7, 2048  ;;  %p946_p11 = scmp.lt.s32.totalorder %s1214_s7, %s1486_s1 }
  0x1a   : > { %p941_p7 = scmp.ne.s32.totalorder %s1214_s7, %s940_s12  ;;  %p947_p12 = scmp.lt.s32.totalorder %s945_s16, %s940_s12 }
  0x1c   : > { %p943_p9 = pnand %p1228_p8, %p941_p7  ;;  %p948_p13 = por %p947_p12, %p946_p11 }
  0x1e   : > { %p944_p10 = pneg %p943_p9 }
  0x20   : > { %p949_p1 = pnand %p948_p13, %p944_p10 }
  0x22   : > { %952 = shalt.err (!%p949_p1)
}
  0x23   : > { %s953_s24 = scalar_lea.vmem %s1220_s9, 2048  ;;  %s1124_s26 = smov [#allocation5]  }
  0x24   : > { %p954_p2 = scmp.ne.s32.totalorder %s1220_s9, %s953_s24  ;;  %s958_s28 = sshll.u32 %s1124_s26, 4  ;;  %s959_s28 = int_to_ptr.vmem [resolvable:$false] %s958_s28 }
  0x25   : > { %s960_s29 = scalar_lea.vmem %s959_s28, 4096  ;;  %p961_p7 = scmp.lt.s32.totalorder %s1220_s9, %s959_s28 }
  0x26   : > { %p956_p4 = pnand %p954_p2, %p1228_p8  ;;  %p962_p9 = scmp.lt.s32.totalorder %s960_s29, %s953_s24 }
  0x28   : > { %p957_p5 = pneg %p956_p4  ;;  %p963_p3 = por %p962_p9, %p961_p7 }
  0x2a   : > { %p964_p0 = pnand %p963_p3, %p957_p5 }
  0x2c   : > { %967 = shalt.err (!%p964_p0)
}
  0x2d   : > { %s1125_s30 = smov 512   ;;  %s1126_s6 = smov 256  }
  0x2e   : > { %s1127_s8 = smov 16   ;;  %s1252_s12 = sadd.s32 4294967295, %s1122_s21  }
  0x2f   : > { %863 = dma.hbm_to_vmem [thread:$0]  (!%p1216_p6), %s1214_s7, 2048, %s1220_s9, %s1222_s11, %s1125_s30, %s1126_s6, %s1127_s8  }
  0x30   : > { %s795_s14 = sadd.s32 4294967294, %s1122_s21   ;;  %p66_p0 = scmp.ne.s32.totalorder %s1114_s19, %s1110_s18 }
  0x31   : > { %p1473_p3 = scmp.eq.s32.totalorder %s1252_s12, 0  ;;  %p168_p10 = scmp.eq.s32.totalorder %s1252_s12, 1 }
  0x32   : > { %p174_p11 = scmp.eq.s32.totalorder %s795_s14, 1  ;;  %p796_p12 = scmp.ge.s32.totalorder %s1122_s21, 1 }
  0x33   : > { %p1262_p13 = por %p1473_p3, %p66_p0  ;;  %p1490_p1 = scmp.ne.s32.totalorder %s1118_s20, %s1114_s19 }
  0x34   : > { %p1273_p4 = por %p174_p11, %p66_p0  ;;  %p181_p5 = scmp.lt.s32.totalorder %s1122_s21, 3 }
  0x35   : > { %s1489_s15 = scalar_select %p1262_p13, 1, 0 }
  0x36   : > { %p1269_p2 = por %p168_p10, %p1490_p1  ;;  %p1278_p7 = pnand %p796_p12, %p181_p5 }
  0x37   : > { %s1492_s9 = scalar_select %p1273_p4, 1, 0 }
  0x38   : > { %s1491_s7 = scalar_select %p1269_p2, 1, 0 }
  0x39   : > { %s1493_s16 = scalar_select %p1278_p7, 1, 0 }
  0x3a   : > { %s1128_s17 = smov [#allocation2]   ;;  %p856_p9 = pneg %p1278_p7 }
  0x3b   : > { %s193_s23 = sshll.u32 %s1128_s17, 4  ;;  %s1474_s24 = sshll.u32 %s1207_s27, 1  ;;  %s194_s23 = int_to_ptr.vmem [resolvable:$true] %s193_s23 }
  0x3c   : > { %s1475_s26 = sshll.u32 %s1122_s21, 5  ;;  %p1288_p10 = pnand %p856_p9, %p1473_p3 }
  0x3d   : > { %s1297_s6 = scalar_lea.hbm %s1468_s2, %s1475_s26  ;;  %s232_s8 = scalar_lea.vmem [#allocation7], %s1474_s24 }
  0x3e   : > { %s240_s14 = sshll.u32 %s232_s8, 4  ;;  %p970_p0 = pneg %p1288_p10  ;;  %s1301_s14 = int_to_ptr.vmem [resolvable:$true] %s240_s14 }
  0x3f   : > { %s979_s17 = scalar_lea.vmem %s194_s23, 512  ;;  %p987_p5 = scmp.lt.s32.totalorder %s194_s23, %s194_s23 }
  0x40   : > { %p980_p11 = scmp.ne.s32.totalorder %s194_s23, %s979_s17  ;;  %p988_p9 = scmp.lt.s32.totalorder %s979_s17, %s979_s17 }
  0x42   : > { %p982_p12 = pnand %p980_p11, %p970_p0  ;;  %p989_p3 = por %p988_p9, %p987_p5 }
  0x44   : > { %p983_p1 = pneg %p982_p12 }
  0x46   : > { %p990_p4 = pnand %p989_p3, %p983_p1 }
  0x48   : > { %993 = shalt.err (!%p990_p4)
}
  0x49   : > { %s1129_s29 = smov 128   ;;  %s1130_s30 = smov 8  }
  0x4a   : > { %859 = dma.hbm_to_vmem [thread:$0]  (!%p1288_p10), %s1466_s0, 512, %s194_s23, [#allocation3], %s1129_s29, %s1129_s29, %s1130_s30  }
  0x4b   : > { %s994_s26 = scalar_lea.hbm %s1297_s6, 32  ;;  %s999_s25 = scalar_lea.hbm %s1468_s2, 64 }
  0x4c   : > { %p995_p0 = scmp.ne.s32.totalorder %s1297_s6, %s994_s26  ;;  %p1000_p3 = scmp.lt.s32.totalorder %s1297_s6, %s1468_s2 }
  0x4d   : > { %p1001_p4 = scmp.lt.s32.totalorder %s999_s25, %s994_s26 }
  0x4e   : > { %p997_p11 = pnand %p995_p0, %p1228_p8 }
  0x4f   : > { %p1002_p1 = por %p1001_p4, %p1000_p3 }
  0x50   : > { %p998_p12 = pneg %p997_p11 }
  0x52   : > { %p1003_p5 = pnand %p1002_p1, %p998_p12 }
  0x54   : > { %1006 = shalt.err (!%p1003_p5)
}
  0x55   : > { %s1007_s23 = scalar_lea.vmem %s1301_s14, 32  ;;  %s1131_s24 = smov [#allocation7]  }
  0x56   : > { %p1008_p10 = scmp.ne.s32.totalorder %s1301_s14, %s1007_s23  ;;  %s1012_s1 = sshll.u32 %s1131_s24, 4  ;;  %s1013_s1 = int_to_ptr.vmem [resolvable:$false] %s1012_s1 }
  0x57   : > { %s1014_s28 = scalar_lea.vmem %s1013_s1, 64  ;;  %p1015_p11 = scmp.lt.s32.totalorder %s1301_s14, %s1013_s1 }
  0x58   : > { %p1010_p9 = pnand %p1008_p10, %p1228_p8  ;;  %p1016_p2 = scmp.lt.s32.totalorder %s1014_s28, %s1007_s23 }
  0x5a   : > { %p1011_p0 = pneg %p1010_p9  ;;  %p1017_p13 = por %p1016_p2, %p1015_p11 }
  0x5c   : > { %p1018_p7 = pnand %p1017_p13, %p1011_p0 }
  0x5e   : > { %1021 = shalt.err (!%p1018_p7)
}
  0x5f   : > { %866 = dma.hbm_to_vmem [thread:$0]  (!%p1216_p6), %s1297_s6, 32, %s1301_s14, %s1222_s11  }
  0x60   : > { %s1495_s20 = sshll.u32 %s1122_s21, 5  ;;  %s1496_s29 = sshll.u32 %s1207_s27, 1 }
  0x61   : > { %s1336_s26 = scalar_lea.hbm %s1470_s4, %s1495_s20  ;;  %s259_s30 = scalar_lea.vmem [#allocation8], %s1496_s29 }
  0x62   : > { %s267_s8 = sshll.u32 %s259_s30, 4  ;;  %s256_s17 = scalar_lea.sflag [#allocation9], %s1207_s27  ;;  %s268_s8 = int_to_ptr.vmem [resolvable:$true] %s267_s8 }
  0x63   : > { %s1022_s23 = scalar_lea.hbm %s1336_s26, 32  ;;  %s1027_s14 = scalar_lea.hbm %s1470_s4, 64 }
  0x64   : > { %p1023_p13 = scmp.ne.s32.totalorder %s1336_s26, %s1022_s23  ;;  %p1028_p12 = scmp.lt.s32.totalorder %s1336_s26, %s1470_s4 }
  0x65   : > { %p1029_p3 = scmp.lt.s32.totalorder %s1027_s14, %s1022_s23 }
  0x66   : > { %p1025_p2 = pnand %p1023_p13, %p1228_p8 }
  0x67   : > { %p1030_p4 = por %p1029_p3, %p1028_p12 }
  0x68   : > { %p1026_p7 = pneg %p1025_p2 }
  0x6a   : > { %p1031_p1 = pnand %p1030_p4, %p1026_p7 }
  0x6c   : > { %1034 = shalt.err (!%p1031_p1)
}
  0x6d   : > { %s1035_s28 = scalar_lea.vmem %s268_s8, 32  ;;  %s1132_s27 = smov [#allocation8]  }
  0x6e   : > { %p1036_p5 = scmp.ne.s32.totalorder %s268_s8, %s1035_s28  ;;  %s1040_s20 = sshll.u32 %s1132_s27, 4  ;;  %s1041_s20 = int_to_ptr.vmem [resolvable:$false] %s1040_s20 }
  0x6f   : > { %s1042_s22 = scalar_lea.vmem %s1041_s20, 64  ;;  %p1043_p0 = scmp.lt.s32.totalorder %s268_s8, %s1041_s20 }
  0x70   : > { %p1038_p10 = pnand %p1036_p5, %p1228_p8  ;;  %p1044_p11 = scmp.lt.s32.totalorder %s1042_s22, %s1035_s28 }
  0x72   : > { %p1039_p9 = pneg %p1038_p10  ;;  %p1045_p13 = por %p1044_p11, %p1043_p0 }
  0x74   : > { %p1046_p2 = pnand %p1045_p13, %p1039_p9 }
  0x76   : > { %1049 = shalt.err (!%p1046_p2)
}
  0x77   : > { %869 = dma.hbm_to_vmem [thread:$0]  (!%p1216_p6), %s1336_s26, 32, %s268_s8, %s256_s17  }
  0x78   : > { %p1497_p7 = scmp.ne.s32.totalorder %s1493_s16, 0 }
  0x79   : > { %p1498_p12 = scmp.eq.s32.totalorder (!%p1497_p7), %s1252_s12, 0 }
  0x7a   : > { %276 = sbr.rel (%p1497_p7) target bundleno = 461 (0x1cd), region = 40 }
  0x7f   : > { %1093 = dma.done.wait (%p1498_p12), [#allocation3], 512   ;;  %p1499_p8 = pmov %p1498_p12 }
  0x80   : > { %s282_s13 = sand.u32 1, %s1252_s12   ;;  %s1365_s25 = sand.u32 1, %s1114_s19  }
  0x81   : > { %1095 = vsyncadd (%p1499_p8), [#allocation3], 4294966784  ;;  %s810_s29 = sshll.u32 %s1365_s25, 7  ;;  %s283_s10 = scalar_lea.sflag [#allocation6], %s282_s13 }
  0x82   : > { %s1368_s30 = scalar_lea.vmem [#allocation5], %s810_s29  ;;  %p1500_p6 = scmp.ne.s32.totalorder %s1489_s15, 0 }
  0x84   : > { %1097 = dma.done.wait (%p1500_p6), %s283_s10, 2080  }
  0x85   : > { %1099 = vsyncadd (%p1500_p6), %s283_s10, 4294965216  ;;  %s811_s16 = sshll.u32 %s1365_s25, 1  ;;  %s301_s8 = scalar_lea.sflag [#allocation9], %s1365_s25 }
  0x86   : > { %s1375_s26 = scalar_lea.vmem [#allocation7], %s811_s16  ;;  %s1378_s17 = scalar_lea.vmem [#allocation8], %s811_s16 }
  0x87   : > { %1101 = dma.done.wait (%p1500_p6), %s301_s8, 32  }
  0x88   : > { %1103 = vsyncadd (%p1500_p6), %s301_s8, 4294967264  ;;  %v1133_v0 = vmov 0.0   ;;  %v373_v1 = vld [vmem:[%s1368_s30 + $0x78] sm:$0xff]  ;;  %v372_v2 = vld [vmem:[%s1368_s30 + $0x70] sm:$0xff]  ;;  %vm386_vm0 = vcmask 523264   ;;  %v376_v21 = vlaneseq  ;;  %s814_s15 = sshll.u32 %s1252_s12, 1 }
  0x89   : > { %463 = vmatprep.mubr.f32.mxu0 %v1133_v0  ;;  %475 = vmatprep.mubr.f32.mxu1 %v1133_v0  ;;  %v371_v3 = vld [vmem:[%s1368_s30 + $0x68] sm:$0xff]  ;;  %v370_v4 = vld [vmem:[%s1368_s30 + $0x60] sm:$0xff]  ;;  %v369_v5 = vld [vmem:[%s1368_s30 + $0x58] sm:$0xff]  ;;  %p348_p3 = scmp.lt.s32.totalorder %s814_s15, 3  ;;  %s813_s14 = sshll.u32 %s1365_s25, 6 }
  0x8a   : > { %415 = vmatprep.subr.mxu0 %v373_v1  ;;  %828 = vmatprep.subr.mxu1 %v373_v1  ;;  %v368_v6 = vld [vmem:[%s1368_s30 + $0x50] sm:$0xff]  ;;  %v367_v7 = vld [vmem:[%s1368_s30 + $0x48] sm:$0xff]  ;;  %v366_v8 = vld [vmem:[%s1368_s30 + $0x40] sm:$0xff]  ;;  %v377_v22 = vshrl.u32 %v376_v21, 7  ;;  %s344_s24 = scalar_lea.vmem [#allocation10], %s813_s14  ;;  %s827_s1 = sshll.u32 %s1252_s12, 8 }
  0x8b   : > { %416 = vmatpush1.msra.mxu0 %v372_v2  ;;  %836 = vmatpush1.msra.mxu1 %v372_v2  ;;  %v365_v9 = vld [vmem:[%s1368_s30 + $0x38] sm:$0xff]  ;;  %v364_v10 = vld [vmem:[%s1368_s30 + $0x30] sm:$0xff]  ;;  %v363_v11 = vld [vmem:[%s1368_s30 + $0x28] sm:$0xff]  ;;  %s1510_s15 = smov (!%p348_p3, %s814_s15), 3  ;;  %s658_s28 = sshll.u32 %s344_s24, 4  ;;  %s1423_s28 = int_to_ptr.vmem [resolvable:$true] %s658_s28 }
  0x8c   : > { %417 = vmatprep.subr.mxu0 %v371_v3  ;;  %829 = vmatprep.subr.mxu1 %v371_v3  ;;  %v362_v12 = vld [vmem:[%s1368_s30 + $0x20] sm:$0xff]  ;;  %v361_v13 = vld [vmem:[%s1368_s30 + $0x18] sm:$0xff]  ;;  %v360_v14 = vld [vmem:[%s1368_s30 + $0x10] sm:$0xff]  ;;  %v1400_v23 = vsub.s32 0, %v377_v22  ;;  %v1403_v25 = vsub.s32 1, %v377_v22  ;;  %s350_s6 = scalar_lea.vmem %s1469_s3, %s1510_s15  ;;  %s1421_s12 = scalar_lea.hbm %s1471_s5, %s827_s1 }
  0x8d   : > { %418 = vmatpush1.msra.mxu0 %v370_v4  ;;  %837 = vmatpush1.msra.mxu1 %v370_v4  ;;  %v359_v15 = vld [vmem:[%s1368_s30 + $0x8] sm:$0xff]  ;;  %v358_v16 = vld [vmem:[%s1368_s30] sm:$0xff]  ;;  %v356_v18 = vld [vmem:[#allocation2 + $0x10] sm:$0xff]  ;;  %s645_s22 = scalar_lea.sflag [#allocation4], %s1365_s25  ;;  %s1050_s13 = scalar_lea.vmem %s1423_s28, 1024 }
  0x8e   : > { %419 = vmatprep.subr.mxu0 %v369_v5  ;;  %830 = vmatprep.subr.mxu1 %v369_v5  ;;  %v354_v17 = vld [vmem:[#allocation2] sm:$0xff]  ;;  %v355_v19 = vld [vmem:[#allocation2 + $0x8] sm:$0xff]  ;;  %v357_v20 = vld [vmem:[#allocation2 + $0x18] sm:$0xff]  ;;  %p1051_p4 = scmp.ne.s32.totalorder %s1423_s28, %s1050_s13  ;;  %p1501_p1 = scmp.ne.s32.totalorder %s1491_s7, 0 }
  0x8f   : > { %420 = vmatpush1.msra.mxu0 %v368_v6  ;;  %838 = vmatpush1.msra.mxu1 %v368_v6  ;;  %v374_v24 = vld [vmem:[%s1375_s26] sm:$0x3]  ;;  %s1134_s29 = smov [#allocation10]  }
  0x90   : > { %421 = vmatprep.subr.mxu0 %v367_v7  ;;  %831 = vmatprep.subr.mxu1 %v367_v7  ;;  %v379_v28 = vrot.slane %v374_v24, %v1400_v23  ;;  %v383_v31 = vrot.slane %v374_v24, %v1403_v25  ;;  %p1052_p5 = pnand %p1051_p4, %p1501_p1  ;;  %s1054_s10 = sshll.u32 %s1134_s29, 4  ;;  %s1055_s10 = int_to_ptr.vmem [resolvable:$false] %s1054_s10 }
  0x91   : > { %422 = vmatpush1.msra.mxu0 %v366_v8  ;;  %839 = vmatpush1.msra.mxu1 %v366_v8  ;;  %s1056_s30 = scalar_lea.vmem %s1055_s10, 2048  ;;  %p1057_p9 = scmp.lt.s32.totalorder %s1423_s28, %s1055_s10 }
  0x92   : > { %423 = vmatprep.subr.mxu0 %v365_v9  ;;  %832 = vmatprep.subr.mxu1 %v365_v9  ;;  %p1053_p10 = pneg %p1052_p5  ;;  %p1058_p0 = scmp.lt.s32.totalorder %s1056_s30, %s1050_s13 }
  0x93   : > { %424 = vmatpush1.msra.mxu0 %v364_v10  ;;  %840 = vmatpush1.msra.mxu1 %v364_v10 }
  0x94   : > { %425 = vmatprep.subr.mxu0 %v363_v11  ;;  %833 = vmatprep.subr.mxu1 %v363_v11  ;;  %p1059_p11 = por %p1058_p0, %p1057_p9 }
  0x95   : > { %426 = vmatpush1.msra.mxu0 %v362_v12  ;;  %841 = vmatpush1.msra.mxu1 %v362_v12 }
  0x96   : > { %427 = vmatprep.subr.mxu0 %v361_v13  ;;  %834 = vmatprep.subr.mxu1 %v361_v13  ;;  %p1060_p13 = pnand %p1059_p11, %p1053_p10 }
  0x97   : > { %428 = vmatpush1.msra.mxu0 %v360_v14  ;;  %842 = vmatpush1.msra.mxu1 %v360_v14 }
  0x98   : > { %429 = vmatprep.subr.mxu0 %v359_v15  ;;  %835 = vmatprep.subr.mxu1 %v359_v15 }
  0x99   : > { %430 = vmatpush1.msra.mxu0 %v358_v16  ;;  %843 = vmatpush1.msra.mxu1 %v358_v16 }
  0x9a   : > { %815 = vmatmul.mubr.msk.f32.vlgmr.msra.gmra.mxu0 %vm386_vm0, %v354_v17  ;;  %817 = vmatmul.mubr.msk.f32.vlgmr.msra.gmra.mxu1 %vm386_vm0, %v356_v18 }
  0x9b   : > { %469 = vmatprep.mubr.f32.mxu0 %v1133_v0  ;;  %481 = vmatprep.mubr.f32.mxu1 %v1133_v0 }
  0x9e   : > { %816 = vmatmul.mubr.msk.f32.gmra.mxu0 %vm386_vm0, %v355_v19  ;;  %818 = vmatmul.mubr.msk.f32.gmra.mxu1 %vm386_vm0, %v357_v20 }
 0x15a   : > { %v465_v26 = vpop.f32.mrf.mxu0  ;;  %v477_v27 = vpop.f32.mrf.mxu1 }
 0x15b   : > { %v466_v34 = vadd.f32 %v465_v26, %v379_v28  ;;  %v478_v36 = vadd.f32 %v477_v27, %v379_v28 }
 0x15c   : > { %v467_v29 = vpop.f32.mrf.mxu0  ;;  %v479_v30 = vpop.f32.mrf.mxu1 }
 0x15d   : > { %v468_v38 = vadd.f32 %v467_v29, %v383_v31  ;;  %v480_v43 = vadd.f32 %v479_v30, %v383_v31 }
 0x15e   : > { %v471_v32 = vpop.f32.mrf.mxu0  ;;  %v483_v33 = vpop.f32.mrf.mxu1 }
 0x15f   : > { %v472_v35 = vadd.f32 %v471_v32, %v379_v28  ;;  %v484_v41 = vadd.f32 %v483_v33, %v379_v28 }
 0x160   : > { %v473_v37 = vpop.f32.mrf.mxu0  ;;  %v485_v42 = vpop.f32.mrf.mxu1 }
 0x161   : > { %v488_v39 = vadd.f32 %v472_v35, %v466_v34  ;;  %v474_v40 = vadd.f32 %v473_v37, %v383_v31  ;;  %v486_v47 = vadd.f32 %v485_v42, %v383_v31 }
 0x163   : > { %v497_v44 = vadd.f32 %v474_v40, %v468_v38  ;;  %v489_v45 = vadd.f32 %v488_v39, %v478_v36 }
 0x165   : > { %v490_v46 = vadd.f32 %v489_v45, %v484_v41  ;;  %v498_v48 = vadd.f32 %v497_v44, %v480_v43 }
 0x167   : > { %v491_v49 = vrot.slane %v490_v46, 4  ;;  %v499_v50 = vadd.f32 %v498_v48, %v486_v47 }
 0x169   : > { %v492_v51 = vadd.f32 %v491_v49, %v490_v46  ;;  %v500_v52 = vrot.slane %v499_v50, 4 }
 0x16b   : > { %v493_v53 = vrot.slane %v492_v51, 2  ;;  %v501_v54 = vadd.f32 %v500_v52, %v499_v50 }
 0x16d   : > { %v494_v55 = vadd.f32 %v493_v53, %v492_v51  ;;  %v502_v56 = vrot.slane %v501_v54, 2 }
 0x16f   : > { %v495_v57 = vrot.slane %v494_v55, 1  ;;  %v503_v58 = vadd.f32 %v502_v56, %v501_v54 }
 0x171   : > { %v496_v59 = vadd.f32 %v495_v57, %v494_v55  ;;  %v504_v60 = vrot.slane %v503_v58, 1 }
 0x173   : > { %v506_v61 = vmul.f32 0.03125, %v496_v59  ;;  %v505_v62 = vadd.f32 %v504_v60, %v503_v58 }
 0x175   : > { %v508_v63 = vsub.f32 %v466_v34, %v506_v61  ;;  %v510_v0 = vsub.f32 %v472_v35, %v506_v61  ;;  %v512_v1 = vsub.f32 %v478_v36, %v506_v61  ;;  %v507_v2 = vmul.f32 0.03125, %v505_v62 }
 0x176   : > { %v514_v3 = vsub.f32 %v484_v41, %v506_v61  ;;  %v576_v41 = vld [vmem:[%s1378_s17] sm:$0x3] }
 0x177   : > { %v516_v4 = vmul.f32 %v508_v63, %v508_v63  ;;  %v518_v5 = vmul.f32 %v510_v0, %v510_v0  ;;  %v509_v6 = vsub.f32 %v468_v38, %v507_v2  ;;  %v511_v7 = vsub.f32 %v474_v40, %v507_v2  ;;  %v556_v40 = vld [vmem:[%s350_s6] sm:$0x3] }
 0x178   : > { %v513_v8 = vsub.f32 %v480_v43, %v507_v2  ;;  %v520_v9 = vmul.f32 %v512_v1, %v512_v1  ;;  %v515_v11 = vsub.f32 %v486_v47, %v507_v2  ;;  %v522_v14 = vmul.f32 %v514_v3, %v514_v3 }
 0x179   : > { %v524_v10 = vadd.f32 %v518_v5, %v516_v4  ;;  %v517_v12 = vmul.f32 %v509_v6, %v509_v6  ;;  %v519_v13 = vmul.f32 %v511_v7, %v511_v7  ;;  %v561_v42 = vrot.slane %v556_v40, %v1400_v23 }
 0x17a   : > { %v521_v16 = vmul.f32 %v513_v8, %v513_v8  ;;  %v523_v19 = vmul.f32 %v515_v11, %v515_v11  ;;  %v581_v44 = vrot.slane %v576_v41, %v1400_v23  ;;  %v565_v49 = vrot.slane %v556_v40, %v1403_v25 }
 0x17b   : > { %v525_v15 = vadd.f32 %v524_v10, %v520_v9  ;;  %v533_v17 = vadd.f32 %v519_v13, %v517_v12  ;;  %v585_v50 = vrot.slane %v576_v41, %v1403_v25 }
 0x17d   : > { %v526_v18 = vadd.f32 %v525_v15, %v522_v14  ;;  %v534_v20 = vadd.f32 %v533_v17, %v521_v16 }
 0x17f   : > { %v527_v21 = vrot.slane %v526_v18, 4  ;;  %v535_v22 = vadd.f32 %v534_v20, %v523_v19 }
 0x181   : > { %v528_v24 = vadd.f32 %v527_v21, %v526_v18  ;;  %v536_v26 = vrot.slane %v535_v22, 4 }
 0x183   : > { %v529_v27 = vrot.slane %v528_v24, 2  ;;  %v537_v28 = vadd.f32 %v536_v26, %v535_v22 }
 0x185   : > { %v530_v29 = vadd.f32 %v529_v27, %v528_v24  ;;  %v538_v30 = vrot.slane %v537_v28, 2 }
 0x187   : > { %v531_v31 = vrot.slane %v530_v29, 1  ;;  %v539_v32 = vadd.f32 %v538_v30, %v537_v28 }
 0x189   : > { %v532_v33 = vadd.f32 %v531_v31, %v530_v29  ;;  %v540_v34 = vrot.slane %v539_v32, 1 }
 0x18b   : > { %v542_v35 = vmul.f32 0.03125, %v532_v33  ;;  %v541_v36 = vadd.f32 %v540_v34, %v539_v32 }
 0x18d   : > { %v544_v37 = vadd.f32 1e-05, %v542_v35  ;;  %v543_v38 = vmul.f32 0.03125, %v541_v36 }
 0x18f   : > { %920 = vrsqrt.f32 %v544_v37  ;;  %v545_v39 = vadd.f32 1e-05, %v543_v38 }
 0x191   : > { %922 = vrsqrt.f32 %v545_v39 }
 0x19c   : > { %v921_v43 = vpop.eup %920 }
 0x19d   : > { %v548_v45 = vmul.f32 %v921_v43, %v508_v63  ;;  %v550_v46 = vmul.f32 %v921_v43, %v510_v0  ;;  %v552_v47 = vmul.f32 %v921_v43, %v512_v1  ;;  %v554_v48 = vmul.f32 %v921_v43, %v514_v3 }
 0x19e   : > { %v923_v51 = vpop.eup %922 }
 0x19f   : > { %v568_v52 = vmul.f32 %v561_v42, %v548_v45  ;;  %v570_v53 = vmul.f32 %v561_v42, %v550_v46  ;;  %v572_v54 = vmul.f32 %v561_v42, %v552_v47  ;;  %v574_v55 = vmul.f32 %v561_v42, %v554_v48 }
 0x1a0   : > { %v549_v56 = vmul.f32 %v923_v51, %v509_v6  ;;  %v551_v57 = vmul.f32 %v923_v51, %v511_v7  ;;  %v553_v58 = vmul.f32 %v923_v51, %v513_v8  ;;  %v555_v59 = vmul.f32 %v923_v51, %v515_v11 }
 0x1a1   : > { %v588_v60 = vadd.f32 %v581_v44, %v568_v52  ;;  %v590_v61 = vadd.f32 %v581_v44, %v570_v53  ;;  %v592_v23 = vadd.f32 %v581_v44, %v572_v54  ;;  %v594_v62 = vadd.f32 %v581_v44, %v574_v55 }
 0x1a2   : > { %v569_v63 = vmul.f32 %v565_v49, %v549_v56  ;;  %v571_v0 = vmul.f32 %v565_v49, %v551_v57  ;;  %v573_v1 = vmul.f32 %v565_v49, %v553_v58  ;;  %v575_v2 = vmul.f32 %v565_v49, %v555_v59 }
 0x1a3   : > { %v604_v3 = vmul.f32 0.70710677, %v588_v60  ;;  %v606_v4 = vmul.f32 0.70710677, %v590_v61  ;;  %v608_v25 = vmul.f32 0.70710677, %v592_v23 }
 0x1a4   : > { %v589_v5 = vadd.f32 %v585_v50, %v569_v63  ;;  %v610_v9 = vmul.f32 0.70710677, %v594_v62  ;;  %v591_v10 = vadd.f32 %v585_v50, %v571_v0  ;;  %v593_v12 = vadd.f32 %v585_v50, %v573_v1 }
 0x1a5   : > { %v595_v6 = vadd.f32 %v585_v50, %v575_v2  ;;  %924 = verf.f32 %v604_v3  ;;  %v596_v16 = vmul.f32 0.5, %v588_v60  ;;  %v598_v19 = vmul.f32 0.5, %v590_v61 }
 0x1a6   : > { %v605_v7 = vmul.f32 0.70710677, %v589_v5  ;;  %926 = verf.f32 %v606_v4  ;;  %v607_v8 = vmul.f32 0.70710677, %v591_v10  ;;  %v609_v11 = vmul.f32 0.70710677, %v593_v12 }
 0x1a7   : > { %928 = verf.f32 %v608_v25  ;;  %v611_v13 = vmul.f32 0.70710677, %v595_v6  ;;  %v600_v22 = vmul.f32 0.5, %v592_v23  ;;  %v602_v28 = vmul.f32 0.5, %v594_v62 }
 0x1a8   : > { %930 = verf.f32 %v610_v9  ;;  %v597_v33 = vmul.f32 0.5, %v589_v5  ;;  %v599_v37 = vmul.f32 0.5, %v591_v10  ;;  %v601_v40 = vmul.f32 0.5, %v593_v12 }
 0x1a9   : > { %932 = verf.f32 %v605_v7  ;;  %v603_v43 = vmul.f32 0.5, %v595_v6 }
 0x1aa   : > { %934 = verf.f32 %v607_v8 }
 0x1ab   : > { %936 = verf.f32 %v609_v11 }
 0x1ac   : > { %938 = verf.f32 %v611_v13 }
 0x1b2   : > { %v925_v14 = vpop.eup %924 }
 0x1b3   : > { %v927_v15 = vpop.eup %926  ;;  %v620_v17 = vadd.f32 1.0, %v925_v14 }
 0x1b4   : > { %v929_v18 = vpop.eup %928  ;;  %v622_v20 = vadd.f32 1.0, %v927_v15 }
 0x1b5   : > { %v931_v21 = vpop.eup %930  ;;  %v624_v24 = vadd.f32 1.0, %v929_v18  ;;  %v628_v26 = vmul.f32 %v620_v17, %v596_v16 }
 0x1b6   : > { %v933_v27 = vpop.eup %932  ;;  %v626_v29 = vadd.f32 1.0, %v931_v21  ;;  %v630_v30 = vmul.f32 %v622_v20, %v598_v19 }
 0x1b7   : > { %v935_v31 = vpop.eup %934  ;;  %v632_v32 = vmul.f32 %v624_v24, %v600_v22  ;;  %636 = vst [vmem:[%s344_s24] sm:$0xff] %v628_v26  ;;  %v621_v34 = vadd.f32 1.0, %v933_v27 }
 0x1b8   : > { %v937_v35 = vpop.eup %936  ;;  %v634_v36 = vmul.f32 %v626_v29, %v602_v28  ;;  %638 = vst [vmem:[%s344_s24 + $0x10] sm:$0xff] %v630_v30  ;;  %v623_v38 = vadd.f32 1.0, %v935_v31 }
 0x1b9   : > { %v939_v39 = vpop.eup %938  ;;  %640 = vst [vmem:[%s344_s24 + $0x20] sm:$0xff] %v632_v32  ;;  %v625_v41 = vadd.f32 1.0, %v937_v35  ;;  %v629_v42 = vmul.f32 %v621_v34, %v597_v33 }
 0x1ba   : > { %642 = vst [vmem:[%s344_s24 + $0x30] sm:$0xff] %v634_v36  ;;  %v627_v44 = vadd.f32 1.0, %v939_v39  ;;  %v631_v45 = vmul.f32 %v623_v38, %v599_v37 }
 0x1bb   : > { %v633_v46 = vmul.f32 %v625_v41, %v601_v40  ;;  %637 = vst [vmem:[%s344_s24 + $0x8] sm:$0xff] %v629_v42 }
 0x1bc   : > { %v635_v47 = vmul.f32 %v627_v44, %v603_v43  ;;  %639 = vst [vmem:[%s344_s24 + $0x18] sm:$0xff] %v631_v45 }
 0x1bd   : > { %641 = vst [vmem:[%s344_s24 + $0x28] sm:$0xff] %v633_v46 }
 0x1be   : > { %643 = vst [vmem:[%s344_s24 + $0x38] sm:$0xff] %v635_v47 }
 0x1bf   : > { %1063 = shalt.err (!%p1060_p13)
}
 0x1c0   : > { %s1064_s16 = scalar_lea.hbm %s1421_s12, 1024  ;;  %s1068_s17 = scalar_lea.hbm %s1471_s5, 2048 }
 0x1c1   : > { %p1065_p2 = scmp.ne.s32.totalorder %s1421_s12, %s1064_s16  ;;  %p1069_p8 = scmp.lt.s32.totalorder %s1421_s12, %s1471_s5 }
 0x1c2   : > { %p1070_p6 = scmp.lt.s32.totalorder %s1068_s17, %s1064_s16 }
 0x1c3   : > { %p1066_p7 = pnand %p1065_p2, %p1501_p1 }
 0x1c4   : > { %p1071_p3 = por %p1070_p6, %p1069_p8 }
 0x1c5   : > { %p1067_p12 = pneg %p1066_p7 }
 0x1c7   : > { %p1072_p4 = pnand %p1071_p3, %p1067_p12 }
 0x1c9   : > { %1075 = shalt.err (!%p1072_p4)
}
 0x1ca   : > { %s1135_s11 = smov 256   ;;  %s1136_s6 = smov 512  }
 0x1cb   : > { %s1137_s14 = smov 16  }
 0x1cc   : > { %854 = dma.vmem_to_hbm [thread:$0]  (%p1501_p1), %s1423_s28, 1024, %s1421_s12, %s645_s22, %s1135_s11, %s1136_s6, %s1137_s14  }
 0x1cd PF: > { %s673_s24 = sand.u32 1, %s1110_s18   ;;  %p1502_p5 = scmp.ne.s32.totalorder %s1492_s9, 0 }
 0x1ce   : > { %p1503_p10 = scmp.ge.s32.totalorder %s1122_s21, 2  ;;  %s674_s1 = scalar_lea.sflag [#allocation4], %s673_s24 }
 0x1d0   : > { %p871_p9 = pnand %p1503_p10, %p1502_p5 }
 0x1d2   : > { %p872_p0 = pneg %p871_p9 }
 0x1d4   : > { %1105 = dma.done.wait (%p872_p0), %s674_s1, 1024  }
 0x1d5   : > { %1107 = vsyncadd (%p872_p0), %s674_s1, 4294966272  ;;  %s1504_s21 = sld [smem:[#allocation16_spill]]  ;;  %s1507_s18 = smov %s1114_s19 }
 0x1d6   : > { %s1505_s27 = sld [smem:[#allocation15_spill]] }
 0x1d7   : > { %s1506_s20 = sld [smem:[#allocation17_spill]] }
 0x1db   : > { %p22_p11 = scmp.ge.s32.totalorder %s1504_s21, 4  }
 0x1dc   : > { %s1508_s19 = smov %s1505_s27 }
 0x1dd   :  { %24 = sbr.rel (!%p22_p11) target bundleno = 10 (0xa), region = 117 }
 0x1e2   :  { %679 = vsyncpa [#allocation3], 1 }
 0x1e3   :  { %681 = vsyncpa [#allocation3 + $0x1], 1 }
 0x1e4   :  { %682 = vsyncpa [#allocation6], 1 }
 0x1e5   :  { %684 = vsyncpa [#allocation6 + $0x1], 1 }
 0x1e6   :  { %685 = vsyncpa [#allocation9], 1 }
 0x1e7   :  { %687 = vsyncpa [#allocation9 + $0x1], 1 }
 0x1e8   :  { %688 = vsyncpa [#allocation4], 1 }
 0x1e9   :  { %690 = vsyncpa [#allocation4 + $0x1], 1 }

</bundles_post_ra>
